<compile_context>
chip_gen: v7x
topology: tpu7x:2x2x1
jax: 0.10.0
libtpu: 0.0.40
codegen_flags: <defaults>
</compile_context>

<pallas_src>
import functools

import jax
import jax.numpy as jnp
from jax.experimental import pallas as pl
from jax.experimental.pallas import tpu as pltpu

_LANE = 128


def _gate_kernel(x_ref, w1_ref, w2_ref, idx_ref, scores_ref, stats_ref,
                 *, num_selects, num_tokens):
    tn = x_ref.shape[0]
    E = w1_ref.shape[1]
    out_w = idx_ref.shape[1]

    # ---- gate network: Linear -> Tanh -> Linear (bias-free). Native dtype
    # (bf16 supported) goes straight to the MXU; accumulation is f32.
    h = jnp.tanh(jnp.dot(x_ref[...], w1_ref[...],
                         preferred_element_type=jnp.float32))
    logits = jnp.dot(h, w2_ref[...],
                     preferred_element_type=jnp.float32)             # [tn, E]

    NEG = jnp.float32(-1e30)
    expert_ids = jax.lax.broadcasted_iota(jnp.int32, (tn, E), 1)

    # ---- iterative top-k (descending, min-index tie-break like torch.topk).
    # Importance contributions are fused into the loop: `sel_exp` holds the
    # unnormalized softmax numerators scattered to their expert slots, so only
    # one [tn, E] accumulator stays live instead of K one-hot arrays.
    work = logits
    sel_exp = jnp.zeros((tn, E), jnp.float32)
    exp_cols = []                      # K x [tn,1] unnormalized numerators
    idx_cols = []                      # K x [tn,1] int32 expert indices
    mx = None
    for k in range(num_selects):
        m = jnp.max(work, axis=1, keepdims=True)                    # [tn,1]
        if k == 0:
            mx = m                                                  # row max
        is_max = work == m
        idx_k = jnp.min(jnp.where(is_max, expert_ids, E),
                        axis=1, keepdims=True)                      # [tn,1]
        onehot = expert_ids == idx_k
        e_k = jnp.exp(m - mx)                                       # [tn,1]
        sel_exp = jnp.where(onehot, e_k, sel_exp)
        work = jnp.where(onehot, NEG, work)
        exp_cols.append(e_k)
        idx_cols.append(idx_k)

    denom = exp_cols[0]
    for e in exp_cols[1:]:
        denom = denom + e
    inv_denom = pl.reciprocal(denom, approx=True)                   # EUP slot
    score_cols = [e * inv_denom for e in exp_cols]                  # K x [tn,1]

    # ---- lane-dense (width-128) batched stores for indices / scores ----
    pad = out_w - num_selects
    idx_parts = idx_cols + ([jnp.zeros((tn, pad), jnp.int32)] if pad else [])
    sc_parts = score_cols + ([jnp.zeros((tn, pad), jnp.float32)] if pad else [])
    idx_ref[...] = jnp.concatenate(idx_parts, axis=1)
    scores_ref[...] = jnp.concatenate(sc_parts, axis=1).astype(scores_ref.dtype)

    # ---- per-tile importance / load partials (overhang rows masked,
    # NaN-safe via jnp.where since OOB rows contain undefined data) ----
    row_ids = pl.program_id(0) * tn + jax.lax.broadcasted_iota(
        jnp.int32, (tn, 1), 0)
    valid = row_ids < num_tokens                                    # [tn,1]
    scores_full = sel_exp * inv_denom                               # [tn,E]
    imp = jnp.sum(jnp.where(valid, scores_full, 0.0),
                  axis=0, keepdims=True)                            # [1,E]
    load = jnp.sum(jnp.where(jnp.logical_and(valid, scores_full > 0.0),
                             1.0, 0.0), axis=0, keepdims=True)      # [1,E]
    stats_ref[...] = jnp.concatenate([imp, load], axis=0)[None]     # (1,2,E)


def _choose_block_rows(n, h, e):
    """Token-tile size.

    Sized against a conservative per-generation VMEM budget (works on v7x's
    64 MiB part); guarantees >=2 grid steps for N > 256 so the "parallel"
    token axis can shard across both v7x TensorCores.
    """
    # per-row bytes: dbl-buffered x + ~12 f32 [.,E] temps + lane-dense
    # output buffers / concat temporaries (~8 * 128 lanes * 4B).
    per_row = 4 * (2 * h + 12 * e + 8 * _LANE)
    tn = (16 << 20) // max(per_row, 1)
    tn = max(128, min(2048, (tn // 128) * 128))
    if n <= 256:
        return n                       # one tile == full array (small inputs)
    if n <= tn:                        # split so megacore has >=2 grid steps
        half = (((n + 1) // 2 + 127) // 128) * 128
        return min(half, tn)
    return tn


def topk_balanced_noisy_gate(x, w1, w2, num_selects,
                             balance_loss_weight=0.01, block_rows=None):
    """x:[N,H], w1:[H,E], w2:[E,E] -> dict like the torch module (eval mode)."""
    N, H = x.shape
    E = w1.shape[1]
    assert w1.shape == (H, E) and w2.shape == (E, E)
    assert 1 <= num_selects <= E

    tn = block_rows if block_rows is not None else _choose_block_rows(N, H, E)
    num_tiles = pl.cdiv(N, tn)
    out_w = max(_LANE, ((num_selects + _LANE - 1) // _LANE) * _LANE)

    kernel = functools.partial(_gate_kernel, num_selects=num_selects,
                               num_tokens=N)

    out_shapes = (
        jax.ShapeDtypeStruct((N, out_w), jnp.int32),       # topK indices (lane-padded)
        jax.ShapeDtypeStruct((N, out_w), x.dtype),         # topK scores  (lane-padded)
        jax.ShapeDtypeStruct((num_tiles, 2, E), jnp.float32),  # imp/load partials
    )

    in_specs = [
        pl.BlockSpec((tn, H), lambda i: (i, 0)),           # x: streamed over tokens
        pl.BlockSpec((H, E), lambda i: (0, 0)),            # w1: resident in VMEM
        pl.BlockSpec((E, E), lambda i: (0, 0)),            # w2: resident in VMEM
    ]
    out_specs = (
        pl.BlockSpec((tn, out_w), lambda i: (i, 0)),
        pl.BlockSpec((tn, out_w), lambda i: (i, 0)),
        pl.BlockSpec((1, 2, E), lambda i: (i, 0, 0)),
    )

    # VMEM accounting: dbl-buffered x + dbl-buffered resident weights +
    # dbl-buffered lane-dense outputs + in-kernel temporaries.
    x_bytes = x.dtype.itemsize
    w_bytes = w1.dtype.itemsize
    need = (2 * tn * H * x_bytes
            + 2 * (H * E + E * E) * w_bytes
            + 2 * 2 * tn * out_w * 4
            + 2 * 2 * E * 4
            + (num_selects + 10) * tn * E * 4
            + 4 * tn * out_w * 4)
    vmem_limit = int(min(max(int(need * 1.4) + (2 << 20), 16 << 20), 40 << 20))

    cost = pl.CostEstimate(
        flops=2 * N * H * E + 2 * N * E * E,
        transcendentals=N * (E + num_selects + 1),
        bytes_accessed=(N * H * x_bytes + (H * E + E * E) * w_bytes
                        + 2 * N * out_w * 4 + num_tiles * 2 * E * 4),
    )

    idx, scores, stats = pl.pallas_call(
        kernel,
        out_shape=out_shapes,
        grid=(num_tiles,),
        in_specs=in_specs,
        out_specs=out_specs,
        compiler_params=pltpu.CompilerParams(
            dimension_semantics=("parallel",),
            vmem_limit_bytes=vmem_limit),
        cost_estimate=cost,
    )(x, w1, w2)

    # cross-tile reduction + balance loss in plain JAX (O(num_tiles * E))
    importance = jnp.sum(stats[:, 0, :], axis=0)            # [E]
    load = jnp.sum(stats[:, 1, :], axis=0)                  # [E]

    if E > 1:
        def cv_squared(v):
            mean = jnp.mean(v)
            var = jnp.sum((v - mean) ** 2) / (E - 1)   # unbiased, matches torch
            return var / (mean * mean + 1e-10)
        balance_loss = balance_loss_weight * (cv_squared(importance)
                                              + cv_squared(load))
    else:
        balance_loss = jnp.float32(0.0)   # torch cv_squared -> 0 for size-1

    return {
        "topK_indices": idx[:, :num_selects],
        "topK_scores": scores[:, :num_selects],
        "balance_loss": balance_loss,
        "load": load,
        "importance": importance,
    }


if __name__ == "__main__":
    key = jax.random.PRNGKey(0)
    N, H, E, K = 8, 32, 8, 2   # tokens, input_size, num_experts, num_selects

    kx, k1, k2 = jax.random.split(key, 3)
    x = jax.random.normal(kx, (N, H), dtype=jnp.float32)

    # Deterministic gate-MLP weights (stored transposed: [in, out]); scale
    # mimics nn.Linear's default uniform(-1/sqrt(fan_in), 1/sqrt(fan_in)).
    w1 = jax.random.uniform(k1, (H, E), dtype=jnp.float32,
                            minval=-1.0, maxval=1.0) / jnp.sqrt(float(H))
    w2 = jax.random.uniform(k2, (E, E), dtype=jnp.float32,
                            minval=-1.0, maxval=1.0) / jnp.sqrt(float(E))

    gate = jax.jit(functools.partial(topk_balanced_noisy_gate, num_selects=K))
    out = gate(x, w1, w2)
    jax.block_until_ready(out)
    print("KERNEL_OK")
</pallas_src>

<mosaic_0001>
module attributes {stable_mosaic.version = 11 : i64} {
  func.func @_gate_kernel(%arg0: i32, %arg1: memref<8x32xf32, #tpu.memory_space<vmem>>, %arg2: memref<32x8xf32, #tpu.memory_space<vmem>>, %arg3: memref<8x8xf32, #tpu.memory_space<vmem>>, %arg4: memref<8x128xi32, #tpu.memory_space<vmem>>, %arg5: memref<8x128xf32, #tpu.memory_space<vmem>>, %arg6: memref<1x2x8xf32, #tpu.memory_space<vmem>>) attributes {dimension_semantics = [#tpu.dimension_semantics<parallel>], iteration_bounds = array<i64: 1>, scalar_prefetch = 0 : i64, scratch_operands = 0 : i64, tpu.core_type = #tpu.core_type<tc>, window_params = [{transform_indices = @transform_0, window_bounds = array<i64: 8, 32>}, {pipeline_mode = #tpu.pipeline_mode<synchronous>, transform_indices = @transform_1, window_bounds = array<i64: 32, 8>}, {pipeline_mode = #tpu.pipeline_mode<synchronous>, transform_indices = @transform_2, window_bounds = array<i64: 8, 8>}, {transform_indices = @transform_3, window_bounds = array<i64: 8, 128>}, {transform_indices = @transform_4, window_bounds = array<i64: 8, 128>}, {transform_indices = @transform_5, window_bounds = array<i64: 1, 2, 8>}]} {
    %c0 = arith.constant 0 : index
    %c0_0 = arith.constant 0 : index
    %0 = vector.load %arg1[%c0, %c0_0] : memref<8x32xf32, #tpu.memory_space<vmem>>, vector<8x32xf32>
    %c0_1 = arith.constant 0 : index
    %c0_2 = arith.constant 0 : index
    %1 = vector.load %arg2[%c0_1, %c0_2] : memref<32x8xf32, #tpu.memory_space<vmem>>, vector<32x8xf32>
    %cst = arith.constant dense<0.000000e+00> : vector<8x8xf32>
    %2 = tpu.matmul %0, %1, %cst {dimension_numbers = #tpu.dot_dimension_numbers<[1], [0], [0], [1], [0, 0, 1, 1], [], []>} : vector<8x32xf32>, vector<32x8xf32>, vector<8x8xf32> -> vector<8x8xf32>
    %3 = math.tanh %2 : vector<8x8xf32>
    %c0_3 = arith.constant 0 : index
    %c0_4 = arith.constant 0 : index
    %4 = vector.load %arg3[%c0_3, %c0_4] : memref<8x8xf32, #tpu.memory_space<vmem>>, vector<8x8xf32>
    %cst_5 = arith.constant dense<0.000000e+00> : vector<8x8xf32>
    %5 = tpu.matmul %3, %4, %cst_5 {dimension_numbers = #tpu.dot_dimension_numbers<[1], [0], [0], [1], [0, 0, 1, 1], [], []>} : vector<8x8xf32>, vector<8x8xf32>, vector<8x8xf32> -> vector<8x8xf32>
    %6 = tpu.iota {dimensions = array<i32: 1>} : vector<8x8xi32>
    %cst_6 = arith.constant 0.000000e+00 : f32
    %7 = vector.broadcast %cst_6 : f32 to vector<8x8xf32>
    %cst_7 = arith.constant dense<0xFF800000> : vector<8xf32>
    %8 = vector.multi_reduction <maximumf>, %5, %cst_7 [1] : vector<8x8xf32> to vector<8xf32>
    %9 = vector.shape_cast %8 : vector<8xf32> to vector<8x1xf32>
    %10 = vector.broadcast %9 : vector<8x1xf32> to vector<8x8xf32>
    %11 = arith.cmpf oeq, %5, %10 : vector<8x8xf32>
    %c8_i32 = arith.constant 8 : i32
    %12 = vector.broadcast %c8_i32 : i32 to vector<8x8xi32>
    %13 = arith.select %11, %6, %12 : vector<8x8xi1>, vector<8x8xi32>
    %cst_8 = arith.constant dense<2147483647> : vector<8xi32>
    %14 = vector.multi_reduction <minsi>, %13, %cst_8 [1] : vector<8x8xi32> to vector<8xi32>
    %15 = vector.shape_cast %14 : vector<8xi32> to vector<8x1xi32>
    %16 = vector.broadcast %15 : vector<8x1xi32> to vector<8x8xi32>
    %17 = arith.cmpi eq, %6, %16 : vector<8x8xi32>
    %18 = arith.subf %9, %9 : vector<8x1xf32>
    %19 = math.exp %18 : vector<8x1xf32>
    %20 = vector.shape_cast %19 : vector<8x1xf32> to vector<8x1xf32>
    %21 = vector.broadcast %20 : vector<8x1xf32> to vector<8x8xf32>
    %22 = arith.select %17, %21, %7 : vector<8x8xi1>, vector<8x8xf32>
    %cst_9 = arith.constant -1.000000e+30 : f32
    %23 = vector.broadcast %cst_9 : f32 to vector<8x8xf32>
    %24 = arith.select %17, %23, %5 : vector<8x8xi1>, vector<8x8xf32>
    %cst_10 = arith.constant dense<0xFF800000> : vector<8xf32>
    %25 = vector.multi_reduction <maximumf>, %24, %cst_10 [1] : vector<8x8xf32> to vector<8xf32>
    %26 = vector.shape_cast %25 : vector<8xf32> to vector<8x1xf32>
    %27 = vector.broadcast %26 : vector<8x1xf32> to vector<8x8xf32>
    %28 = arith.cmpf oeq, %24, %27 : vector<8x8xf32>
    %c8_i32_11 = arith.constant 8 : i32
    %29 = vector.broadcast %c8_i32_11 : i32 to vector<8x8xi32>
    %30 = arith.select %28, %6, %29 : vector<8x8xi1>, vector<8x8xi32>
    %cst_12 = arith.constant dense<2147483647> : vector<8xi32>
    %31 = vector.multi_reduction <minsi>, %30, %cst_12 [1] : vector<8x8xi32> to vector<8xi32>
    %32 = vector.shape_cast %31 : vector<8xi32> to vector<8x1xi32>
    %33 = vector.broadcast %32 : vector<8x1xi32> to vector<8x8xi32>
    %34 = arith.cmpi eq, %6, %33 : vector<8x8xi32>
    %35 = arith.subf %26, %9 : vector<8x1xf32>
    %36 = math.exp %35 : vector<8x1xf32>
    %37 = vector.shape_cast %36 : vector<8x1xf32> to vector<8x1xf32>
    %38 = vector.broadcast %37 : vector<8x1xf32> to vector<8x8xf32>
    %39 = arith.select %34, %38, %22 : vector<8x8xi1>, vector<8x8xf32>
    %40 = arith.addf %19, %36 : vector<8x1xf32>
    %41 = tpu.reciprocal %40 {approx = true} : vector<8x1xf32> -> vector<8x1xf32>
    %42 = arith.mulf %19, %41 : vector<8x1xf32>
    %43 = arith.mulf %36, %41 : vector<8x1xf32>
    %c0_i32 = arith.constant 0 : i32
    %44 = vector.broadcast %c0_i32 : i32 to vector<8x126xi32>
    %cst_13 = arith.constant 0.000000e+00 : f32
    %45 = vector.broadcast %cst_13 : f32 to vector<8x126xf32>
    %46 = tpu.concatenate %15, %32, %44 in 1 : vector<8x1xi32>, vector<8x1xi32>, vector<8x126xi32> -> vector<8x128xi32>
    %c0_14 = arith.constant 0 : index
    %c0_15 = arith.constant 0 : index
    %47 = vector.load %arg4[%c0_14, %c0_15] : memref<8x128xi32, #tpu.memory_space<vmem>>, vector<8x128xi32>
    tpu.vector_store %arg4[%c0_14, %c0_15], %46 {strides = array<i32>} : memref<8x128xi32, #tpu.memory_space<vmem>>, vector<8x128xi32>,
    %48 = tpu.concatenate %42, %43, %45 in 1 : vector<8x1xf32>, vector<8x1xf32>, vector<8x126xf32> -> vector<8x128xf32>
    %c0_16 = arith.constant 0 : index
    %c0_17 = arith.constant 0 : index
    %49 = vector.load %arg5[%c0_16, %c0_17] : memref<8x128xf32, #tpu.memory_space<vmem>>, vector<8x128xf32>
    tpu.vector_store %arg5[%c0_16, %c0_17], %48 {strides = array<i32>} : memref<8x128xf32, #tpu.memory_space<vmem>>, vector<8x128xf32>,
    %c8_i32_18 = arith.constant 8 : i32
    %50 = arith.muli %arg0, %c8_i32_18 : i32
    %51 = tpu.iota {dimensions = array<i32: 0>} : vector<8x1xi32>
    %52 = vector.broadcast %50 : i32 to vector<8x1xi32>
    %53 = arith.addi %52, %51 : vector<8x1xi32>
    %c8_i32_19 = arith.constant 8 : i32
    %54 = vector.broadcast %c8_i32_19 : i32 to vector<8x1xi32>
    %55 = arith.cmpi slt, %53, %54 : vector<8x1xi32>
    %56 = vector.broadcast %41 : vector<8x1xf32> to vector<8x8xf32>
    %57 = arith.mulf %39, %56 : vector<8x8xf32>
    %cst_20 = arith.constant 0.000000e+00 : f32
    %58 = vector.shape_cast %55 : vector<8x1xi1> to vector<8x1xi1>
    %59 = vector.broadcast %58 : vector<8x1xi1> to vector<8x8xi1>
    %60 = vector.broadcast %cst_20 : f32 to vector<8x8xf32>
    %61 = arith.select %59, %57, %60 : vector<8x8xi1>, vector<8x8xf32>
    %cst_21 = arith.constant dense<0.000000e+00> : vector<8xf32>
    %62 = vector.multi_reduction <add>, %61, %cst_21 [0] : vector<8x8xf32> to vector<8xf32>
    %63 = vector.shape_cast %62 : vector<8xf32> to vector<1x8xf32>
    %cst_22 = arith.constant 0.000000e+00 : f32
    %64 = vector.broadcast %cst_22 : f32 to vector<8x8xf32>
    %65 = arith.cmpf ogt, %57, %64 : vector<8x8xf32>
    %66 = vector.broadcast %55 : vector<8x1xi1> to vector<8x8xi1>
    %67 = arith.andi %66, %65 : vector<8x8xi1>
    %cst_23 = arith.constant 1.000000e+00 : f32
    %cst_24 = arith.constant 0.000000e+00 : f32
    %68 = vector.broadcast %cst_23 : f32 to vector<8x8xf32>
    %69 = vector.broadcast %cst_24 : f32 to vector<8x8xf32>
    %70 = arith.select %67, %68, %69 : vector<8x8xi1>, vector<8x8xf32>
    %cst_25 = arith.constant dense<0.000000e+00> : vector<8xf32>
    %71 = vector.multi_reduction <add>, %70, %cst_25 [0] : vector<8x8xf32> to vector<8xf32>
    %72 = vector.shape_cast %71 : vector<8xf32> to vector<1x8xf32>
    %73 = tpu.concatenate %63, %72 in 0 : vector<1x8xf32>, vector<1x8xf32> -> vector<2x8xf32>
    %74 = vector.shape_cast %73 : vector<2x8xf32> to vector<1x2x8xf32>
    %c0_26 = arith.constant 0 : index
    %c0_27 = arith.constant 0 : index
    %c0_28 = arith.constant 0 : index
    %75 = vector.load %arg6[%c0_26, %c0_27, %c0_28] : memref<1x2x8xf32, #tpu.memory_space<vmem>>, vector<1x2x8xf32>
    tpu.vector_store %arg6[%c0_26, %c0_27, %c0_28], %74 {strides = array<i32>} : memref<1x2x8xf32, #tpu.memory_space<vmem>>, vector<1x2x8xf32>,
    return
  }
  func.func @transform_0(%arg0: i32) -> (i32, i32) {
    %c0_i32 = arith.constant 0 : i32
    %c0_i32_0 = arith.constant 0 : i32
    return %arg0, %c0_i32 : i32, i32
  }
  func.func @transform_1(%arg0: i32) -> (i32, i32) {
    %c0_i32 = arith.constant 0 : i32
    %c0_i32_0 = arith.constant 0 : i32
    %c0_i32_1 = arith.constant 0 : i32
    return %c0_i32, %c0_i32_0 : i32, i32
  }
  func.func @transform_2(%arg0: i32) -> (i32, i32) {
    %c0_i32 = arith.constant 0 : i32
    %c0_i32_0 = arith.constant 0 : i32
    %c0_i32_1 = arith.constant 0 : i32
    return %c0_i32, %c0_i32_0 : i32, i32
  }
  func.func @transform_3(%arg0: i32) -> (i32, i32) {
    %c0_i32 = arith.constant 0 : i32
    %c0_i32_0 = arith.constant 0 : i32
    return %arg0, %c0_i32 : i32, i32
  }
  func.func @transform_4(%arg0: i32) -> (i32, i32) {
    %c0_i32 = arith.constant 0 : i32
    %c0_i32_0 = arith.constant 0 : i32
    return %arg0, %c0_i32 : i32, i32
  }
  func.func @transform_5(%arg0: i32) -> (i32, i32, i32) {
    %c0_i32 = arith.constant 0 : i32
    %c0_i32_0 = arith.constant 0 : i32
    %c0_i32_1 = arith.constant 0 : i32
    return %arg0, %c0_i32, %c0_i32_0 : i32, i32, i32
  }
}

</mosaic_0001>

<bundles_post_ra>
// kernel: topk_balanced_noisy_gate.1
= control target key start
LH: loop header
LB: loop body
LE: loop exit
PB: predicated region body
PF: predicated region fallthrough
CT: control target
= control target key end

     0   :  { %v322_v0 = vmov 0.0|0.0   ;;  %vm323_vm0 = vmmov 0   ;;  %v324_v4 = vmov 0.0   ;;  %vm22_vm1 = vcmask 261120   ;;  %s407_s1 = inlined_call_operand.vmem [shape: f32[32,8], index: 1, kind: input, shape index: {}]   ;;  %s408_s0 = inlined_call_operand.vmem [shape: f32[8,32], index: 0, kind: input, shape index: {}]   ;;  %s409_s2 = inlined_call_operand.vmem [shape: f32[8,8], index: 2, kind: input, shape index: {}]   ;;  %s410_s4 = inlined_call_operand.vmem [shape: f32[8,128], index: 4, kind: output, shape index: {1}]   ;;  %s411_s3 = inlined_call_operand.vmem [shape: s32[8,128], index: 3, kind: output, shape index: {0}]   ;;  %s412_s5 = inlined_call_operand.vmem [shape: f32[1,2,8], index: 5, kind: output, shape index: {2}]  }
   0x1   :  { %305 = vmatprep.subr.bf16.mxu0 %v322_v0  ;;  %v18_v1 = vld [vmem:[%s407_s1] sm:$0xff]  ;;  %v19_v2 = vld [vmem:[%s407_s1 + $0x8] sm:$0xff]  ;;  %v20_v3 = vld [vmem:[%s407_s1 + $0x10] sm:$0xff]  ;;  %297 = vmatprep.mubr.msk.f32.mxu0 %vm323_vm0, %v324_v4  ;;  %vm98_vm2 = vcmask 64512   ;;  %v172_v16 = vlaneseq  ;;  %vm229_vm7 = vcmask 7168   ;;  %vm231_vm8 = vcmask 15360  }
   0x2   :  { %v306_v5 = vpack.c.bf16 %v19_v2, %v18_v1  ;;  %v21_v6 = vld [vmem:[%s407_s1 + $0x18] sm:$0xff]  ;;  %300 = vmatprep.subr.mxu1 %v324_v4  ;;  %302 = vmatprep.mubr.msk.f32.mxu1 %vm323_vm0, %v324_v4  ;;  %v17_v8 = vld [vmem:[%s408_s0] sm:$0xff]  ;;  %vm264_vm12 = vcmask 1040384   ;;  %vm266_vm13 = vcmask 58368  }
   0x3   :  { %v309_v7 = vpack.c.bf16 %v21_v6, %v20_v3  ;;  %v97_v9 = vld [vmem:[%s409_s2] sm:$0xff]  ;;  %v378_v17 = vand.u32 127, %v172_v16 }
   0x4   :  { %307 = vmatpush3.bf16.msra.mxu0 %v306_v5  ;;  %301 = vmatpush3.msra.mxu1 %v97_v9 }
   0x5   :  { %308 = vmatprep.subr.bf16.mxu0 %v322_v0 }
   0x8   :  { %310 = vmatpush3.bf16.msra.mxu0 %v309_v7 }
   0xb   :  { %298 = vmatmul.mubr.msk.f32.vlgmr.msra.gmra.mrb[0].mxu0 %vm22_vm1, %v17_v8 }
  0xde   :  { %v92_v10 = vpop.f32.mrb[0].mxu0 }
  0xdf   :  { %314 = vtanh.f32 %v92_v10  ;;  %v299_v11 = vpop.f32.mrb[1].mxu0 }
  0xe9   :  { %v315_v12 = vpop.eup %314 }
  0xea   :  { %303 = vmatmul.mubr.msk.f32.vlgmr.msra.gmra.mrb[0].mxu1 %vm98_vm2, %v315_v12 }
 0x1bd   :  { %v168_v13 = vpop.f32.mrb[0].mxu1 }
 0x1be   :  { %v304_v14 = vpop.f32.mrb[1].mxu1  ;;  %v174_v15 = vsel %vm98_vm2, %v168_v13, -inf }
 0x1bf   :  { %175 = vmax.xlane.f32.xlu0 %v174_v15 }
 0x24c   :  { %v176_v18 = vpop.xlane.xlu0 %175 }
 0x24d   :  { %vm177_vm3 = vcmp.eq.f32.partialorder %v168_v13, %v176_v18  ;;  %v195_v34 = vsub.f32 %v176_v18, %v176_v18 }
 0x24e   :  { %v178_v19 = vsel %vm177_vm3, %v378_v17, 8 }
 0x24f   :  { %v179_v20 = vsel %vm98_vm2, %v178_v19, 2147483647  ;;  %v196_v35 = vmul.f32 1.442695, %v195_v34 }
 0x250   :  { %v181_v21 = vshra.s32 %v179_v20, 16  ;;  %v180_v23 = vand.u32 65535, %v179_v20 }
 0x251   :  { %316 = vpow2.f32 %v196_v35 }
 0x252   :  { %v183_v22 = vcvt.s32.f32 %v181_v21  ;;  %v182_v25 = vcvt.s32.f32 %v180_v23 }
 0x254   :  { %184 = vmin.xlane.f32.xlu0 %v183_v22 }
 0x25b   :  { %v317_v43 = vpop.eup %316 }
 0x2e1   :  { %v185_v24 = vpop.xlane.xlu0 %184 }
 0x2e2   :  { %vm186_vm4 = vcmp.eq.f32.partialorder %v183_v22, %v185_v24  ;;  %v191_v27 = vcvt.f32.s32 %v185_v24 }
 0x2e3   :  { %v187_v26 = vsel %vm186_vm4, %v182_v25, inf }
 0x2e4   :  { %188 = vmin.xlane.f32.xlu1 %v187_v26  ;;  %v192_v29 = vshll.u32 %v191_v27, 16 }
 0x371   :  { %v189_v28 = vpop.xlane.xlu1 %188 }
 0x372   :  { %v190_v30 = vcvt.f32.s32 %v189_v28 }
 0x374   :  { %v193_v31 = vadd.s32 %v192_v29, %v190_v30 }
 0x376   :  { %vm194_vm5 = vcmp.eq.s32.totalorder %v378_v17, %v193_v31 }
 0x377   :  { %v199_v32 = vsel %vm194_vm5, -1e+30, %v168_v13  ;;  %v198_v60 = vsel %vm194_vm5, %v317_v43, 0.0 }
 0x378   :  { %v200_v33 = vsel %vm98_vm2, %v199_v32, -inf }
 0x379   :  { %201 = vmax.xlane.f32.xlu1 %v200_v33 }
 0x406   :  { %v202_v36 = vpop.xlane.xlu1 %201 }
 0x407   :  { %vm203_vm6 = vcmp.eq.f32.partialorder %v199_v32, %v202_v36  ;;  %v221_v37 = vsub.f32 %v202_v36, %v176_v18 }
 0x408   :  { %v204_v38 = vsel %vm203_vm6, %v378_v17, 8 }
 0x409   :  { %v222_v39 = vmul.f32 1.442695, %v221_v37  ;;  %v205_v40 = vsel %vm98_vm2, %v204_v38, 2147483647 }
 0x40a   :  { %v207_v41 = vshra.s32 %v205_v40, 16  ;;  %v206_v51 = vand.u32 65535, %v205_v40 }
 0x40b   :  { %318 = vpow2.f32 %v222_v39 }
 0x40c   :  { %v209_v42 = vcvt.s32.f32 %v207_v41  ;;  %v208_v53 = vcvt.s32.f32 %v206_v51 }
 0x40e   :  { %210 = vmin.xlane.f32.xlu0 %v209_v42 }
 0x415   :  { %v319_v44 = vpop.eup %318 }
 0x416   :  { %v225_v45 = vadd.f32 %v319_v44, %v317_v43 }
 0x418   :  { %320 = vrcp.f32 %v225_v45 }
 0x422   :  { %v321_v46 = vpop.eup %320 }
 0x423   :  { %v227_v47 = vmul.f32 %v321_v46, %v317_v43  ;;  %v228_v48 = vmul.f32 %v321_v46, %v319_v44 }
 0x425   :  { %v234_v49 = vsel %vm229_vm7, %v227_v47, %v228_v48 }
 0x426   :  { %v235_v50 = vsel %vm231_vm8, %v234_v49, 0.0 }
 0x427   :  { %236 = vst [vmem:[%s410_s4] sm:$0xff] %v235_v50 }
 0x49b   :  { %v211_v52 = vpop.xlane.xlu0 %210 }
 0x49c   :  { %vm212_vm9 = vcmp.eq.f32.partialorder %v209_v42, %v211_v52  ;;  %v217_v55 = vcvt.f32.s32 %v211_v52 }
 0x49d   :  { %v213_v54 = vsel %vm212_vm9, %v208_v53, inf }
 0x49e   :  { %214 = vmin.xlane.f32.xlu1 %v213_v54  ;;  %v218_v57 = vshll.u32 %v217_v55, 16 }
 0x52b   :  { %v215_v56 = vpop.xlane.xlu1 %214 }
 0x52c   :  { %v216_v58 = vcvt.f32.s32 %v215_v56 }
 0x52e   :  { %v219_v59 = vadd.s32 %v218_v57, %v216_v58 }
 0x530   :  { %vm220_vm10 = vcmp.eq.s32.totalorder %v378_v17, %v219_v59  ;;  %v230_v61 = vsel %vm229_vm7, %v193_v31, %v219_v59 }
 0x531   :  { %v224_v62 = vsel %vm220_vm10, %v319_v44, %v198_v60  ;;  %v232_v63 = vsel %vm231_vm8, %v230_v61, 0 }
 0x532   :  { %233 = vst [vmem:[%s411_s3] sm:$0xff] %v232_v63  ;;  %v243_v0 = vmul.f32 %v321_v46, %v224_v62 }
 0x534   :  { %v247_v1 = vsel %vm98_vm2, %v243_v0, 0.0  ;;  %vm254_vm11 = vcmp.gt.f32.partialorder %v243_v0, 0.0 }
 0x535   :  { %v248_v2 = vrot.slane %v247_v1, 4  ;;  %v256_v3 = vsel %vm254_vm11, 1.0, %v324_v4 }
 0x536   :  { %v257_v5 = vsel %vm98_vm2, %v256_v3, 0.0 }
 0x537   :  { %v249_v6 = vadd.f32 %v248_v2, %v247_v1  ;;  %v258_v7 = vrot.slane %v257_v5, 4 }
 0x539   :  { %v250_v8 = vrot.slane %v249_v6, 2  ;;  %v259_v9 = vadd.f32 %v258_v7, %v257_v5 }
 0x53b   :  { %v251_v10 = vadd.f32 %v250_v8, %v249_v6  ;;  %v260_v11 = vrot.slane %v259_v9, 2 }
 0x53d   :  { %v252_v12 = vrot.slane %v251_v10, 1  ;;  %v261_v13 = vadd.f32 %v260_v11, %v259_v9 }
 0x53f   :  { %v262_v14 = vrot.slane %v261_v13, 1  ;;  %v253_v15 = vadd.f32 %v252_v12, %v251_v10 }
 0x541   :  { %v263_v16 = vadd.f32 %v262_v14, %v261_v13 }
 0x543   :  { %v265_v17 = vsel %vm264_vm12, %v253_v15, %v263_v16 }
 0x544   :  { %267 = vst.msk [vmem:[%s412_s5] sm:$0x3] %vm266_vm13, %v265_v17 }

</bundles_post_ra>
